<compile_context>
chip_gen: v5e
topology: v5e:2x2
jax: 0.10.0
libtpu: 0.0.40
codegen_flags: <defaults>
</compile_context>

<pallas_src>
import jax
import jax.numpy as jnp
from jax.experimental import pallas as pl
from jax.experimental.pallas import tpu as pltpu

HIDDEN = 128


def _round_up(n, m):
    return ((n + m - 1) // m) * m


def actor_critic_kernel(x_ref, w1_ref, b1_ref, w2_ref, b2_ref, wh_ref, bh_ref,
                        actor_ref, value_ref):
    a = actor_ref.shape[-1]                                             # static
    x = x_ref[...]                                                      # (TM, S) bf16
    # fc1 + ReLU (f32 accumulate, bf16 operands for the next MXU pass)
    h1 = jnp.dot(x, w1_ref[...], preferred_element_type=jnp.float32) + b1_ref[...]
    h1 = jnp.maximum(h1, 0.0).astype(x.dtype)                           # (TM, 128)
    # fc2 + ReLU
    h2 = jnp.dot(h1, w2_ref[...], preferred_element_type=jnp.float32) + b2_ref[...]
    h2 = jnp.maximum(h2, 0.0).astype(x.dtype)                           # (TM, 128)
    # fused actor+critic head: one MXU pass -> (TM, head_pad)
    head = jnp.dot(h2, wh_ref[...], preferred_element_type=jnp.float32) + bh_ref[...]
    actor_ref[...] = head[:, :a].astype(actor_ref.dtype)
    value_ref[...] = head[:, a:a + 1].astype(value_ref.dtype)


def pack_params(params):
    """Fuse actor+critic heads and cast weights to bf16 ONCE (hoisted out of the
    per-forward path). Returns a pytree consumed directly by actor_critic_forward."""
    H = params["w1"].shape[1]
    A = params["wa"].shape[1]
    head_pad = _round_up(A + 1, 8)          # A actor lanes + 1 critic lane, 8-aligned
    w_head = jnp.zeros((H, head_pad), jnp.float32)
    w_head = w_head.at[:, :A].set(params["wa"]).at[:, A:A + 1].set(params["wc"])
    b_head = jnp.zeros((1, head_pad), jnp.float32)
    b_head = b_head.at[:, :A].set(params["ba"]).at[:, A:A + 1].set(params["bc"])
    cast = lambda a: a.astype(jnp.bfloat16)  # bf16 MXU operands, f32 accumulation
    return {
        "w1": cast(params["w1"]), "b1": params["b1"].astype(jnp.float32),
        "w2": cast(params["w2"]), "b2": params["b2"].astype(jnp.float32),
        "wh": cast(w_head),       "bh": b_head,
    }


def _choose_tm(batch):
    # Large tiles amortise per-grid-step overhead; keep >= 2 steps once the batch
    # allows it (v7x has 2 TensorCores) and never pad a tiny batch past the 8-row
    # sublane granule.
    tm = min(2048, _round_up(pl.cdiv(batch, 2), 256))
    return max(8, min(tm, _round_up(batch, 8)))


def actor_critic_forward(x, packed, *, action_size, tm=None):
    """x: (B, state_size). packed: output of pack_params().
    Returns (actor_logits (B, action_size), value (B, 1)), both f32."""
    B, S = x.shape
    H = packed["w1"].shape[1]
    head_pad = packed["wh"].shape[1]
    A = action_size
    assert A + 1 <= head_pad

    tm = _choose_tm(B) if tm is None else tm
    n_tiles = pl.cdiv(B, tm)
    B_pad = n_tiles * tm

    x_c = x.astype(jnp.bfloat16)
    x_pad = x_c if B_pad == B else jnp.zeros((B_pad, S), jnp.bfloat16).at[:B, :].set(x_c)

    # Constant block index -> weights/biases stay resident in VMEM (no re-DMA after
    # the first grid step); only x and the outputs are pipelined per tile.
    def resident(shape):
        return pl.BlockSpec(shape, lambda i: (0, 0))

    cost = pl.CostEstimate(
        flops=2 * B_pad * (S * H + H * H + H * head_pad),
        transcendentals=0,
        bytes_accessed=(x_pad.size * 2                              # bf16 activations in
                        + (S * H + H * H + H * head_pad) * 2        # bf16 weights
                        + (2 * H + head_pad) * 4                    # f32 biases
                        + B_pad * (A + 1) * 4),                     # f32 outputs
    )

    actor_out, value_out = pl.pallas_call(
        actor_critic_kernel,
        out_shape=(jax.ShapeDtypeStruct((B_pad, A), jnp.float32),
                   jax.ShapeDtypeStruct((B_pad, 1), jnp.float32)),
        grid=(n_tiles,),
        in_specs=[
            pl.BlockSpec((tm, S), lambda i: (i, 0)),   # x tile (pipelined)
            resident((S, H)),                          # w1
            resident((1, H)),                          # b1
            resident((H, H)),                          # w2
            resident((1, H)),                          # b2
            resident((H, head_pad)),                   # fused actor+critic weight
            resident((1, head_pad)),                   # fused actor+critic bias
        ],
        out_specs=(pl.BlockSpec((tm, A), lambda i: (i, 0)),
                   pl.BlockSpec((tm, 1), lambda i: (i, 0))),
        compiler_params=pltpu.CompilerParams(dimension_semantics=("parallel",)),
        cost_estimate=cost,
    )(x_pad, packed["w1"], packed["b1"], packed["w2"], packed["b2"],
      packed["wh"], packed["bh"])

    if B_pad != B:
        actor_out, value_out = actor_out[:B], value_out[:B]
    return actor_out, value_out


def init_params(key, state_size=4, action_size=8, hidden=HIDDEN):
    """Kaiming-normal (fan_in, relu gain) weights, zero biases -- same scheme as the
    PyTorch module; weights stored transposed as (in, out)."""
    ks = jax.random.split(key, 4)

    def kaiming(k, fan_in, fan_out):
        std = jnp.sqrt(2.0 / fan_in)
        return jax.random.normal(k, (fan_in, fan_out), dtype=jnp.float32) * std

    return {
        "w1": kaiming(ks[0], state_size, hidden),
        "b1": jnp.zeros((1, hidden), jnp.float32),
        "w2": kaiming(ks[1], hidden, hidden),
        "b2": jnp.zeros((1, hidden), jnp.float32),
        "wa": kaiming(ks[2], hidden, action_size),
        "ba": jnp.zeros((1, action_size), jnp.float32),
        "wc": kaiming(ks[3], hidden, 1),
        "bc": jnp.zeros((1, 1), jnp.float32),
    }


def reference_forward(x, p):
    h1 = jnp.maximum(x @ p["w1"] + p["b1"], 0.0)
    h2 = jnp.maximum(h1 @ p["w2"] + p["b2"], 0.0)
    return h2 @ p["wa"] + p["ba"], h2 @ p["wc"] + p["bc"]


if __name__ == "__main__":
    key = jax.random.PRNGKey(0)
    kx, kx2, kp = jax.random.split(key, 3)

    S, A = 4, 8
    params = init_params(kp, state_size=S, action_size=A)
    packed = pack_params(params)          # fuse heads + cast to bf16 ONCE

    # Small batch (single tile) -- the shape the PyTorch module implies.
    B = 2
    x = jax.random.normal(kx, (B, S), dtype=jnp.float32)
    actor_logits, value = actor_critic_forward(x, packed, action_size=A)
    jax.block_until_ready((actor_logits, value))

    ref_logits, ref_value = reference_forward(x, params)
    assert actor_logits.shape == (B, A) and value.shape == (B, 1)
    # bf16 operands (f32 accumulation) -> relaxed tolerance vs. the f32 reference.
    assert jnp.allclose(actor_logits, ref_logits, atol=5e-2, rtol=5e-2)
    assert jnp.allclose(value, ref_value, atol=5e-2, rtol=5e-2)

    # Larger, non-multiple batch -- exercises the multi-step grid + padding path.
    B2 = 300
    x2 = jax.random.normal(kx2, (B2, S), dtype=jnp.float32)
    a2, v2 = actor_critic_forward(x2, packed, action_size=A)
    jax.block_until_ready((a2, v2))
    r2a, r2v = reference_forward(x2, params)
    assert a2.shape == (B2, A) and v2.shape == (B2, 1)
    assert jnp.allclose(a2, r2a, atol=5e-2, rtol=5e-2)
    assert jnp.allclose(v2, r2v, atol=5e-2, rtol=5e-2)

    print("KERNEL_OK")
</pallas_src>

<mosaic_0001>
module attributes {stable_mosaic.version = 11 : i64} {
  func.func @actor_critic_kernel(%arg0: i32, %arg1: memref<8x4xbf16, #tpu.memory_space<vmem>>, %arg2: memref<4x128xbf16, #tpu.memory_space<vmem>>, %arg3: memref<1x128xf32, #tpu.memory_space<vmem>>, %arg4: memref<128x128xbf16, #tpu.memory_space<vmem>>, %arg5: memref<1x128xf32, #tpu.memory_space<vmem>>, %arg6: memref<128x16xbf16, #tpu.memory_space<vmem>>, %arg7: memref<1x16xf32, #tpu.memory_space<vmem>>, %arg8: memref<8x8xf32, #tpu.memory_space<vmem>>, %arg9: memref<8x1xf32, #tpu.memory_space<vmem>>) attributes {dimension_semantics = [#tpu.dimension_semantics<parallel>], iteration_bounds = array<i64: 1>, scalar_prefetch = 0 : i64, scratch_operands = 0 : i64, tpu.core_type = #tpu.core_type<tc>, window_params = [{transform_indices = @transform_0, window_bounds = array<i64: 8, 4>}, {pipeline_mode = #tpu.pipeline_mode<synchronous>, transform_indices = @transform_1, window_bounds = array<i64: 4, 128>}, {pipeline_mode = #tpu.pipeline_mode<synchronous>, transform_indices = @transform_2, window_bounds = array<i64: 1, 128>}, {pipeline_mode = #tpu.pipeline_mode<synchronous>, transform_indices = @transform_3, window_bounds = array<i64: 128, 128>}, {pipeline_mode = #tpu.pipeline_mode<synchronous>, transform_indices = @transform_4, window_bounds = array<i64: 1, 128>}, {pipeline_mode = #tpu.pipeline_mode<synchronous>, transform_indices = @transform_5, window_bounds = array<i64: 128, 16>}, {pipeline_mode = #tpu.pipeline_mode<synchronous>, transform_indices = @transform_6, window_bounds = array<i64: 1, 16>}, {transform_indices = @transform_7, window_bounds = array<i64: 8, 8>}, {transform_indices = @transform_8, window_bounds = array<i64: 8, 1>}]} {
    %c0 = arith.constant 0 : index
    %c0_0 = arith.constant 0 : index
    %0 = vector.load %arg1[%c0, %c0_0] : memref<8x4xbf16, #tpu.memory_space<vmem>>, vector<8x4xbf16>
    %c0_1 = arith.constant 0 : index
    %c0_2 = arith.constant 0 : index
    %1 = vector.load %arg2[%c0_1, %c0_2] : memref<4x128xbf16, #tpu.memory_space<vmem>>, vector<4x128xbf16>
    %cst = arith.constant dense<0.000000e+00> : vector<8x128xf32>
    %2 = tpu.matmul %0, %1, %cst {dimension_numbers = #tpu.dot_dimension_numbers<[1], [0], [0], [1], [0, 0, 1, 1], [], []>} : vector<8x4xbf16>, vector<4x128xbf16>, vector<8x128xf32> -> vector<8x128xf32>
    %c0_3 = arith.constant 0 : index
    %c0_4 = arith.constant 0 : index
    %3 = vector.load %arg3[%c0_3, %c0_4] : memref<1x128xf32, #tpu.memory_space<vmem>>, vector<1x128xf32>
    %4 = vector.broadcast %3 : vector<1x128xf32> to vector<8x128xf32>
    %5 = arith.addf %2, %4 : vector<8x128xf32>
    %cst_5 = arith.constant 0.000000e+00 : f32
    %6 = vector.broadcast %cst_5 : f32 to vector<8x128xf32>
    %7 = arith.maximumf %5, %6 : vector<8x128xf32>
    %8 = arith.truncf %7 : vector<8x128xf32> to vector<8x128xbf16>
    %c0_6 = arith.constant 0 : index
    %c0_7 = arith.constant 0 : index
    %9 = vector.load %arg4[%c0_6, %c0_7] : memref<128x128xbf16, #tpu.memory_space<vmem>>, vector<128x128xbf16>
    %cst_8 = arith.constant dense<0.000000e+00> : vector<8x128xf32>
    %10 = tpu.matmul %8, %9, %cst_8 {dimension_numbers = #tpu.dot_dimension_numbers<[1], [0], [0], [1], [0, 0, 1, 1], [], []>} : vector<8x128xbf16>, vector<128x128xbf16>, vector<8x128xf32> -> vector<8x128xf32>
    %c0_9 = arith.constant 0 : index
    %c0_10 = arith.constant 0 : index
    %11 = vector.load %arg5[%c0_9, %c0_10] : memref<1x128xf32, #tpu.memory_space<vmem>>, vector<1x128xf32>
    %12 = vector.broadcast %11 : vector<1x128xf32> to vector<8x128xf32>
    %13 = arith.addf %10, %12 : vector<8x128xf32>
    %cst_11 = arith.constant 0.000000e+00 : f32
    %14 = vector.broadcast %cst_11 : f32 to vector<8x128xf32>
    %15 = arith.maximumf %13, %14 : vector<8x128xf32>
    %16 = arith.truncf %15 : vector<8x128xf32> to vector<8x128xbf16>
    %c0_12 = arith.constant 0 : index
    %c0_13 = arith.constant 0 : index
    %17 = vector.load %arg6[%c0_12, %c0_13] : memref<128x16xbf16, #tpu.memory_space<vmem>>, vector<128x16xbf16>
    %cst_14 = arith.constant dense<0.000000e+00> : vector<8x16xf32>
    %18 = tpu.matmul %16, %17, %cst_14 {dimension_numbers = #tpu.dot_dimension_numbers<[1], [0], [0], [1], [0, 0, 1, 1], [], []>} : vector<8x128xbf16>, vector<128x16xbf16>, vector<8x16xf32> -> vector<8x16xf32>
    %c0_15 = arith.constant 0 : index
    %c0_16 = arith.constant 0 : index
    %19 = vector.load %arg7[%c0_15, %c0_16] : memref<1x16xf32, #tpu.memory_space<vmem>>, vector<1x16xf32>
    %20 = vector.broadcast %19 : vector<1x16xf32> to vector<8x16xf32>
    %21 = arith.addf %18, %20 : vector<8x16xf32>
    %22 = vector.extract_strided_slice %21 {offsets = [0, 0], sizes = [8, 8], strides = [1, 1]} : vector<8x16xf32> to vector<8x8xf32>
    %c0_17 = arith.constant 0 : index
    %c0_18 = arith.constant 0 : index
    %23 = vector.load %arg8[%c0_17, %c0_18] : memref<8x8xf32, #tpu.memory_space<vmem>>, vector<8x8xf32>
    tpu.vector_store %arg8[%c0_17, %c0_18], %22 {strides = array<i32>} : memref<8x8xf32, #tpu.memory_space<vmem>>, vector<8x8xf32>,
    %24 = vector.extract_strided_slice %21 {offsets = [0, 8], sizes = [8, 1], strides = [1, 1]} : vector<8x16xf32> to vector<8x1xf32>
    %c0_19 = arith.constant 0 : index
    %c0_20 = arith.constant 0 : index
    %25 = vector.load %arg9[%c0_19, %c0_20] : memref<8x1xf32, #tpu.memory_space<vmem>>, vector<8x1xf32>
    tpu.vector_store %arg9[%c0_19, %c0_20], %24 {strides = array<i32>} : memref<8x1xf32, #tpu.memory_space<vmem>>, vector<8x1xf32>,
    return
  }
  func.func @transform_0(%arg0: i32) -> (i32, i32) {
    %c0_i32 = arith.constant 0 : i32
    %c0_i32_0 = arith.constant 0 : i32
    return %arg0, %c0_i32 : i32, i32
  }
  func.func @transform_1(%arg0: i32) -> (i32, i32) {
    %c0_i32 = arith.constant 0 : i32
    %c0_i32_0 = arith.constant 0 : i32
    %c0_i32_1 = arith.constant 0 : i32
    return %c0_i32, %c0_i32_0 : i32, i32
  }
  func.func @transform_2(%arg0: i32) -> (i32, i32) {
    %c0_i32 = arith.constant 0 : i32
    %c0_i32_0 = arith.constant 0 : i32
    %c0_i32_1 = arith.constant 0 : i32
    return %c0_i32, %c0_i32_0 : i32, i32
  }
  func.func @transform_3(%arg0: i32) -> (i32, i32) {
    %c0_i32 = arith.constant 0 : i32
    %c0_i32_0 = arith.constant 0 : i32
    %c0_i32_1 = arith.constant 0 : i32
    return %c0_i32, %c0_i32_0 : i32, i32
  }
  func.func @transform_4(%arg0: i32) -> (i32, i32) {
    %c0_i32 = arith.constant 0 : i32
    %c0_i32_0 = arith.constant 0 : i32
    %c0_i32_1 = arith.constant 0 : i32
    return %c0_i32, %c0_i32_0 : i32, i32
  }
  func.func @transform_5(%arg0: i32) -> (i32, i32) {
    %c0_i32 = arith.constant 0 : i32
    %c0_i32_0 = arith.constant 0 : i32
    %c0_i32_1 = arith.constant 0 : i32
    return %c0_i32, %c0_i32_0 : i32, i32
  }
  func.func @transform_6(%arg0: i32) -> (i32, i32) {
    %c0_i32 = arith.constant 0 : i32
    %c0_i32_0 = arith.constant 0 : i32
    %c0_i32_1 = arith.constant 0 : i32
    return %c0_i32, %c0_i32_0 : i32, i32
  }
  func.func @transform_7(%arg0: i32) -> (i32, i32) {
    %c0_i32 = arith.constant 0 : i32
    %c0_i32_0 = arith.constant 0 : i32
    return %arg0, %c0_i32 : i32, i32
  }
  func.func @transform_8(%arg0: i32) -> (i32, i32) {
    %c0_i32 = arith.constant 0 : i32
    %c0_i32_0 = arith.constant 0 : i32
    return %arg0, %c0_i32 : i32, i32
  }
}

</mosaic_0001>

<bundles_post_ra>
// kernel: tpu_custom_call.1
= control target key start
LH: loop header
LB: loop body
LE: loop exit
PB: predicated region body
PF: predicated region fallthrough
CT: control target
= control target key end

     0   :  { %vm40_vm0 = vcmask 1041408   ;;  %vm36_vm1 = vcmask 31744   ;;  %s479_s0 = inlined_call_operand.vmem [shape: bf16[8,4], index: 0, kind: input, shape index: {}]   ;;  %s480_s1 = inlined_call_operand.vmem [shape: bf16[4,128], index: 1, kind: input, shape index: {}]   ;;  %s481_s2 = inlined_call_operand.vmem [shape: f32[1,128], index: 2, kind: input, shape index: {}]   ;;  %s482_s3 = inlined_call_operand.vmem [shape: bf16[128,128], index: 3, kind: input, shape index: {}]   ;;  %s483_s4 = inlined_call_operand.vmem [shape: f32[1,128], index: 4, kind: input, shape index: {}]   ;;  %s484_s5 = inlined_call_operand.vmem [shape: bf16[128,16], index: 5, kind: input, shape index: {}]   ;;  %s485_s6 = inlined_call_operand.vmem [shape: f32[1,16], index: 6, kind: input, shape index: {}]   ;;  %s486_s7 = inlined_call_operand.hbm [shape: f32[8,8], index: 7, kind: output, shape index: {0}]   ;;  %s487_s8 = inlined_call_operand.vmem [shape: f32[8,1], index: 8, kind: output, shape index: {1}]  }
   0x1   :  { %v31_v0 = vld [vmem:[%s480_s1] sm:$0x3]  ;;  %v323_v2 = vld [vmem:[%s482_s3 + $0x38] sm:$0xff]  ;;  %v322_v4 = vld [vmem:[%s482_s3 + $0x30] sm:$0xff] }
   0x2   :  { %v42_v1 = vsel %vm40_vm0, %v31_v0, 0  ;;  %v30_v3 = vld [vmem:[%s479_s0] sm:$0xf]  ;;  %127 = vmatpush.bf16.msra.mxu1 %v323_v2 }
   0x3   :  { %51 = vmatpush.bf16.msra.mxu0 %v42_v1 }
   0x4   :  { %14 = vsyncpa [#allocation3], 0  ;;  %v321_v5 = vld [vmem:[%s482_s3 + $0x28] sm:$0xff]  ;;  %v320_v6 = vld [vmem:[%s482_s3 + $0x20] sm:$0xff]  ;;  %s363_s19 = smov [#allocation2]   ;;  %vm223_vm2 = vcmask 64512  }
   0x5   :  { %v319_v7 = vld [vmem:[%s482_s3 + $0x18] sm:$0xff]  ;;  %v318_v8 = vld [vmem:[%s482_s3 + $0x10] sm:$0xff]  ;;  %v317_v9 = vld [vmem:[%s482_s3 + $0x8] sm:$0xff]  ;;  %s236_s20 = sshll.u32 %s363_s19, 4  ;;  %vm229_vm3 = vcmask 7168   ;;  %s237_s20 = int_to_ptr.vmem [resolvable:$true] %s236_s20 }
   0x6   :  { %251 = vmatmul.msk.bf16.vlgmr.msra.gmra.mxu0 %vm36_vm1, %v30_v3  ;;  %128 = vmatpush.bf16.msra.mxu1 %v322_v4  ;;  %v316_v10 = vld [vmem:[%s482_s3] sm:$0xff]  ;;  %v331_v11 = vld [vmem:[%s484_s5 + $0x38] sm:$0xff]  ;;  %v330_v12 = vld [vmem:[%s484_s5 + $0x30] sm:$0xff] }
   0x7   :  { %210 = vmatpush.bf16.msra.mxu2 %v331_v11  ;;  %v329_v13 = vld [vmem:[%s484_s5 + $0x28] sm:$0xff]  ;;  %v328_v14 = vld [vmem:[%s484_s5 + $0x20] sm:$0xff]  ;;  %v327_v15 = vld [vmem:[%s484_s5 + $0x18] sm:$0xff] }
   0x8   :  { %v326_v16 = vld [vmem:[%s484_s5 + $0x10] sm:$0xff]  ;;  %v334_v17 = vld [vmem:[%s481_s2] ss:$0 sm:$0xff]  ;;  %v325_v23 = vld [vmem:[%s484_s5 + $0x8] sm:$0xff] }
   0x9   :  { %v324_v24 = vld [vmem:[%s484_s5] sm:$0xff]  ;;  %s238_s5 = sshll.u32 %s486_s7, 4  ;;  %s239_s5 = int_to_ptr.hbm [resolvable:$true] %s238_s5 }
   0xa   :  { %129 = vmatpush.bf16.msra.mxu1 %v321_v5  ;;  %v335_v25 = vld [vmem:[%s483_s4] ss:$0 sm:$0xff]  ;;  %s364_s4 = smov 120  }
   0xb   :  { %211 = vmatpush.bf16.msra.mxu2 %v330_v12  ;;  %v336_v31 = vld [vmem:[%s485_s6] ss:$0 sm:$0xff] }
   0xe   :  { %130 = vmatpush.bf16.msra.mxu1 %v320_v6 }
   0xf   :  { %212 = vmatpush.bf16.msra.mxu2 %v329_v13 }
  0x12   :  { %131 = vmatpush.bf16.msra.mxu1 %v319_v7 }
  0x13   :  { %213 = vmatpush.bf16.msra.mxu2 %v328_v14 }
  0x16   :  { %132 = vmatpush.bf16.msra.mxu1 %v318_v8 }
  0x17   :  { %214 = vmatpush.bf16.msra.mxu2 %v327_v15 }
  0x1a   :  { %133 = vmatpush.bf16.msra.mxu1 %v317_v9 }
  0x1b   :  { %215 = vmatpush.bf16.msra.mxu2 %v326_v16 }
  0x1e   :  { %134 = vmatpush.bf16.msra.mxu1 %v316_v10 }
  0x1f   :  { %216 = vmatpush.bf16.msra.mxu2 %v325_v23 }
  0x23   :  { %217 = vmatpush.bf16.msra.mxu2 %v324_v24 }
  0x83   :  { %v53_v18 = vpop.f32.mrf.mxu0 }
  0x84   :  { %v54_v19 = vadd.f32 %v334_v17, %v53_v18 }
  0x86   :  { %v57_v20 = vmax.f32 %v54_v19, 0.0 }
  0x88   :  { %v58_v21 = vpack.c.bf16 %v57_v20, %v57_v20 }
  0x8a   :  { %135 = vmatmul.bf16.vlgmr.msra.gmra.mxu1 %v58_v21 }
  0x8b   :  { %v55_v22 = vpop.f32.mrf.mxu0 }
 0x107   :  { %v136_v26 = vpop.f32.mrf.mxu1 }
 0x108   :  { %v137_v27 = vadd.f32 %v335_v25, %v136_v26 }
 0x10a   :  { %v140_v28 = vmax.f32 %v137_v27, 0.0 }
 0x10c   :  { %v141_v29 = vpack.c.bf16 %v140_v28, %v140_v28 }
 0x10e   :  { %218 = vmatmul.bf16.vlgmr.msra.gmra.mxu2 %v141_v29 }
 0x10f   :  { %v138_v30 = vpop.f32.mrf.mxu1 }
 0x191   :  { %v219_v32 = vpop.f32.mrf.mxu2 }
 0x192   :  { %v220_v33 = vadd.f32 %v336_v31, %v219_v32 }
 0x194   :  { %224 = vst.msk [vmem:[#allocation2] sm:$0xff] %vm223_vm2, %v220_v33  ;;  %226 = vrot.lane.b32.xlu0 %v220_v33, %s364_s4 }
 0x195   :  { %241 = dma.vmem_to_hbm [thread:$0]  %s237_s20, 128, %s239_s5, [#allocation3]  }
 0x199   :  { %v221_v34 = vpop.f32.mrf.mxu2 }
 0x206   :  { %v227_v35 = vpop.permute.xlu0 %226 }
 0x207   :  { %230 = vst.msk [vmem:[%s487_s8] sm:$0xff] %vm229_vm3, %v227_v35 }
 0x208   :  { %361 = dma.done.wait [#allocation3], 128  }
 0x209   :  { %362 = vsyncadd [#allocation3], 4294967168 }
 0x20a   :  { %250 = vsyncpa [#allocation3], 1 }

</bundles_post_ra>
